<compile_context>
chip_gen: v7x
topology: tpu7x:2x2x1
jax: 0.10.0
libtpu: 0.0.40
codegen_flags: <defaults>
</compile_context>

<pallas_src>
import jax
import jax.numpy as jnp
from jax import lax
from jax.experimental import pallas as pl
from jax.experimental.pallas import tpu as pltpu


def _round_up(x, m):
    return (x + m - 1) // m * m


def _pick_unroll(tc, cap=8):
    """Largest divisor of tc that is <= cap (keeps scan unroll exact)."""
    for u in range(min(tc, cap), 0, -1):
        if tc % u == 0:
            return u
    return 1


# ---------------------------------------------------------------------------
# Fused Pallas kernel: L tanh-RNN layers (time-chunked) + FC head.
# ---------------------------------------------------------------------------
def _make_rnn_fused_kernel(num_layers, t_real, t_chunk, n_split, unroll,
                           mask_tail):
    def kernel(*refs):
        # refs = (x_chunk, [w_ih_t, w_hh_t, b] * L, fc_w_t, fc_b, out,
        #         buf_a, buf_b, h_state)
        x_ref = refs[0]
        layer_refs = refs[1:1 + 3 * num_layers]
        fc_w_ref = refs[1 + 3 * num_layers]
        fc_b_ref = refs[2 + 3 * num_layers]
        out_ref = refs[3 + 3 * num_layers]
        buf_a = refs[4 + 3 * num_layers]      # (TC*Bs, H) pre-activations
        buf_b = refs[5 + 3 * num_layers]      # (TC*Bs, H) hidden sequence
        h_state = refs[6 + 3 * num_layers]    # (L, Bs, H) carried hidden

        c = pl.program_id(1)                  # time-chunk index ("arbitrary")
        nc = pl.num_programs(1)
        Bs = out_ref.shape[0]                 # per-shard (padded) batch
        Bh = Bs // n_split

        # Reset the carried hidden state at the start of each shard's sweep.
        @pl.when(c == 0)
        def _init():
            h_state[...] = jnp.zeros_like(h_state)

        in_ref = x_ref                        # (TC*Bs, D) then (TC*Bs, H)
        h_final = None

        for layer in range(num_layers):
            w_ih_ref = layer_refs[3 * layer + 0]
            w_hh_ref = layer_refs[3 * layer + 1]
            b_ref = layer_refs[3 * layer + 2]

            # Hoisted input projection for the whole chunk: one MXU GEMM.
            # Ping-pong: read `in_ref` (x block or buf_b), write buf_a, so
            # there is never an aliased read-modify-write of a scratch buffer.
            buf_a[...] = (
                jnp.dot(in_ref[...], w_ih_ref[...],
                        preferred_element_type=jnp.float32)
                + b_ref[...])

            w_hh = w_hh_ref[...]              # (H, H), lives in vregs
            store_hidden = layer < num_layers - 1

            def step(t, hs, _w_hh=w_hh, _store=store_hidden):
                off = pl.multiple_of(t * Bs, Bs)
                if mask_tail:
                    valid = (c * t_chunk + t) < t_real   # padded-time guard
                new_hs = []
                for s in range(n_split):       # independent ILP chains
                    start = pl.multiple_of(off + s * Bh, Bh)
                    h_s = hs[s]
                    g = buf_a[pl.ds(start, Bh), :] + jnp.dot(
                        h_s, _w_hh, preferred_element_type=jnp.float32)
                    h_new = jnp.tanh(g)
                    if mask_tail:
                        h_new = jnp.where(valid, h_new, h_s)
                    if _store:
                        # Next layer's input; its pre-activations for this row
                        # were already consumed by the projection above.
                        buf_b[pl.ds(start, Bh), :] = h_new
                    new_hs.append(h_new)
                return tuple(new_hs)

            h0 = tuple(h_state[layer, s * Bh:(s + 1) * Bh, :]
                       for s in range(n_split))
            hs = lax.fori_loop(0, t_chunk, step, h0, unroll=unroll)
            h_final = hs[0] if n_split == 1 else jnp.concatenate(hs, axis=0)
            h_state[layer] = h_final           # carry across time chunks
            in_ref = buf_b                     # ping-pong for next layer

        # Fused FC head on the last (real) time step of the last layer.
        @pl.when(c == nc - 1)
        def _head():
            out_ref[...] = (
                jnp.dot(h_final, fc_w_ref[...],
                        preferred_element_type=jnp.float32)
                + fc_b_ref[...]).astype(out_ref.dtype)

    return kernel


# ---------------------------------------------------------------------------
# Wrapper
# ---------------------------------------------------------------------------
def rnn_forward(x, params, *, time_chunk=None):
    """x: (B, T, D) float32  ->  logits (B, num_classes) float32."""
    B, T, D = x.shape
    L = len(params["w_ih_t"])
    H = params["w_hh_t"][0].shape[0]
    C = params["fc_w_t"].shape[1]

    lane = lambda n: _round_up(n, 128)

    # --- batch padding & (v7x) megacore batch sharding ---------------------
    B_pad = max(8, _round_up(B, 8))
    n_shards = 2 if B_pad % 16 == 0 else 1    # 2 TCs on v7x; harmless on 1 TC
    Bs = B_pad // n_shards
    n_split = 2 if Bs % 16 == 0 else 1        # per-step ILP sub-chains

    # --- time chunking: bound VMEM & enable DMA/compute overlap ------------
    if time_chunk is None:
        per_t = Bs * 4 * (2 * lane(D) + 2 * lane(H))   # x dbl-buf + ping-pong
        time_chunk = max(1, (8 << 20) // max(per_t, 1))
    TC = max(1, min(int(time_chunk), T))
    NC = -(-T // TC)
    T_pad = NC * TC
    unroll = _pick_unroll(TC, 8)
    mask_tail = T_pad != T

    # --- host-side layout: (n_shards, T_pad * Bs, D), time-major -----------
    xp = x
    if B_pad != B:
        xp = jnp.pad(xp, ((0, B_pad - B), (0, 0), (0, 0)))
    if T_pad != T:
        xp = jnp.pad(xp, ((0, 0), (0, T_pad - T), (0, 0)))
    xp = xp.reshape(n_shards, Bs, T_pad, D).transpose(0, 2, 1, 3)
    xp = xp.reshape(n_shards, T_pad * Bs, D)

    args = [xp]
    for l in range(L):
        args += [params["w_ih_t"][l], params["w_hh_t"][l], params["b"][l]]
    args += [params["fc_w_t"], params["fc_b"]]

    # --- explicit VMEM limit (padded, conservative, fits all generations) --
    est = 2 * _round_up(TC * Bs, 8) * lane(D) * 4      # x slab (double buffer)
    est += 2 * _round_up(TC * Bs, 8) * lane(H) * 4     # ping-pong scratch
    est += L * _round_up(Bs, 8) * lane(H) * 4          # carried hidden state
    est += 2 * _round_up(Bs, 8) * lane(C) * 4          # output block
    for a in args[1:]:
        r, cd = a.shape
        est += 2 * _round_up(r, 8) * lane(cd) * 4      # weights (double buffer)
    vmem_limit = int(min(max(2 * est, 16 << 20), 48 << 20))

    const2d = lambda p, c: (0, 0)
    in_specs = [pl.BlockSpec((None, TC * Bs, D), lambda p, c: (p, c, 0))]
    for a in args[1:]:
        in_specs.append(pl.BlockSpec(a.shape, const2d))
    out_spec = pl.BlockSpec((Bs, C), lambda p, c: (p, 0))

    out_pad = pl.pallas_call(
        _make_rnn_fused_kernel(L, T, TC, n_split, unroll, mask_tail),
        out_shape=jax.ShapeDtypeStruct((B_pad, C), jnp.float32),
        grid_spec=pltpu.PrefetchScalarGridSpec(
            num_scalar_prefetch=0,
            grid=(n_shards, NC),
            in_specs=in_specs,
            out_specs=out_spec,
            scratch_shapes=[
                pltpu.VMEM((TC * Bs, H), jnp.float32),   # buf_a
                pltpu.VMEM((TC * Bs, H), jnp.float32),   # buf_b
                pltpu.VMEM((L, Bs, H), jnp.float32),     # carried hidden
            ]),
        compiler_params=pltpu.CompilerParams(
            dimension_semantics=("parallel", "arbitrary"),
            vmem_limit_bytes=vmem_limit),
    )(*args)
    return out_pad[:B]


rnn_forward_jit = jax.jit(rnn_forward, static_argnames=("time_chunk",))


# ---------------------------------------------------------------------------
# Deterministic parameter construction (PyTorch nn.RNN-style shapes / init)
# ---------------------------------------------------------------------------
def init_params(key, input_size, hidden_size, num_layers, num_classes):
    k = 1.0 / jnp.sqrt(hidden_size)
    w_ih_t, w_hh_t, biases = [], [], []
    for layer in range(num_layers):
        in_dim = input_size if layer == 0 else hidden_size
        key, k1, k2, k3, k4 = jax.random.split(key, 5)
        w_ih = jax.random.uniform(k1, (hidden_size, in_dim), jnp.float32, -k, k)
        w_hh = jax.random.uniform(k2, (hidden_size, hidden_size),
                                  jnp.float32, -k, k)
        b_ih = jax.random.uniform(k3, (hidden_size,), jnp.float32, -k, k)
        b_hh = jax.random.uniform(k4, (hidden_size,), jnp.float32, -k, k)
        w_ih_t.append(w_ih.T)                    # (in_dim, H)
        w_hh_t.append(w_hh.T)                    # (H, H)
        biases.append((b_ih + b_hh)[None, :])    # (1, H)

    key, k1, k2 = jax.random.split(key, 3)
    kf = 1.0 / jnp.sqrt(hidden_size)
    fc_w = jax.random.uniform(k1, (num_classes, hidden_size),
                              jnp.float32, -kf, kf)
    fc_b = jax.random.uniform(k2, (num_classes,), jnp.float32, -kf, kf)
    return {
        "w_ih_t": tuple(w_ih_t),
        "w_hh_t": tuple(w_hh_t),
        "b": tuple(biases),
        "fc_w_t": fc_w.T,                        # (H, C)
        "fc_b": fc_b[None, :],                   # (1, C)
    }


# ---------------------------------------------------------------------------
# Pure-JAX reference (lax.scan) for a correctness check
# ---------------------------------------------------------------------------
def _rnn_layer_ref(x_tbd, w_ih_t, w_hh_t, bias):
    B = x_tbd.shape[1]
    H = w_hh_t.shape[0]

    def step(h, x_t):
        h_new = jnp.tanh(x_t @ w_ih_t + h @ w_hh_t + bias)
        return h_new, h_new

    h0 = jnp.zeros((B, H), jnp.float32)
    _, hs = lax.scan(step, h0, x_tbd)
    return hs


def rnn_forward_ref(x, params):
    h = jnp.transpose(x, (1, 0, 2))              # (T, B, D)
    for w_ih_t, w_hh_t, bias in zip(params["w_ih_t"], params["w_hh_t"],
                                    params["b"]):
        h = _rnn_layer_ref(h, w_ih_t, w_hh_t, bias)
    return h[-1] @ params["fc_w_t"] + params["fc_b"]


# ---------------------------------------------------------------------------
if __name__ == "__main__":
    key = jax.random.PRNGKey(0)

    def run_case(batch, seq_len, input_size, hidden_size, num_layers,
                 num_classes, time_chunk, key):
        key, xk, pk = jax.random.split(key, 3)
        x = jax.random.normal(xk, (batch, seq_len, input_size), jnp.float32)
        params = init_params(pk, input_size, hidden_size, num_layers,
                             num_classes)
        out = jax.block_until_ready(
            rnn_forward_jit(x, params, time_chunk=time_chunk))
        assert out.shape == (batch, num_classes), out.shape
        ref = jax.block_until_ready(rnn_forward_ref(x, params))
        err = float(jnp.max(jnp.abs(out - ref)))
        assert jnp.allclose(out, ref, atol=1e-4, rtol=1e-3), err
        return key

    # Small config: single batch shard, TC divides T (no tail masking),
    # two time chunks exercise the carried hidden state.
    key = run_case(batch=2, seq_len=8, input_size=28, hidden_size=32,
                   num_layers=2, num_classes=10, time_chunk=4, key=key)

    # Larger config: 2 batch shards (v7x "parallel" axis), 2 ILP sub-chains,
    # ragged time (T=20 padded to 24, masked tail), partial unroll (TC=12 -> 6).
    key = run_case(batch=32, seq_len=20, input_size=28, hidden_size=32,
                   num_layers=2, num_classes=10, time_chunk=12, key=key)

    print("KERNEL_OK")
</pallas_src>

<mosaic_0001>
module attributes {stable_mosaic.version = 11 : i64} {
  func.func @kernel(%arg0: i32, %arg1: i32, %arg2: memref<1x32x28xf32, #tpu.memory_space<vmem>>, %arg3: memref<28x32xf32, #tpu.memory_space<vmem>>, %arg4: memref<32x32xf32, #tpu.memory_space<vmem>>, %arg5: memref<1x32xf32, #tpu.memory_space<vmem>>, %arg6: memref<32x32xf32, #tpu.memory_space<vmem>>, %arg7: memref<32x32xf32, #tpu.memory_space<vmem>>, %arg8: memref<1x32xf32, #tpu.memory_space<vmem>>, %arg9: memref<32x10xf32, #tpu.memory_space<vmem>>, %arg10: memref<1x10xf32, #tpu.memory_space<vmem>>, %arg11: memref<8x10xf32, #tpu.memory_space<vmem>>, %arg12: memref<32x32xf32, #tpu.memory_space<vmem>>, %arg13: memref<32x32xf32, #tpu.memory_space<vmem>>, %arg14: memref<2x8x32xf32, #tpu.memory_space<vmem>>) attributes {dimension_semantics = [#tpu.dimension_semantics<parallel>, #tpu.dimension_semantics<arbitrary>], iteration_bounds = array<i64: 1, 2>, scalar_prefetch = 0 : i64, scratch_operands = 3 : i64, tpu.core_type = #tpu.core_type<tc>, window_params = [{transform_indices = @transform_0, window_bounds = array<i64: 1, 32, 28>}, {pipeline_mode = #tpu.pipeline_mode<synchronous>, transform_indices = @transform_1, window_bounds = array<i64: 28, 32>}, {pipeline_mode = #tpu.pipeline_mode<synchronous>, transform_indices = @transform_2, window_bounds = array<i64: 32, 32>}, {pipeline_mode = #tpu.pipeline_mode<synchronous>, transform_indices = @transform_3, window_bounds = array<i64: 1, 32>}, {pipeline_mode = #tpu.pipeline_mode<synchronous>, transform_indices = @transform_4, window_bounds = array<i64: 32, 32>}, {pipeline_mode = #tpu.pipeline_mode<synchronous>, transform_indices = @transform_5, window_bounds = array<i64: 32, 32>}, {pipeline_mode = #tpu.pipeline_mode<synchronous>, transform_indices = @transform_6, window_bounds = array<i64: 1, 32>}, {pipeline_mode = #tpu.pipeline_mode<synchronous>, transform_indices = @transform_7, window_bounds = array<i64: 32, 10>}, {pipeline_mode = #tpu.pipeline_mode<synchronous>, transform_indices = @transform_8, window_bounds = array<i64: 1, 10>}, {transform_indices = @transform_9, window_bounds = array<i64: 8, 10>}]} {
    %c0_i32 = arith.constant 0 : i32
    %0 = arith.cmpi eq, %arg1, %c0_i32 : i32
    %1 = arith.extui %0 : i1 to i32
    %c0_i32_0 = arith.constant 0 : i32
    %2 = arith.cmpi ne, %1, %c0_i32_0 : i32
    scf.if %2 {
      %cst_76 = arith.constant 0.000000e+00 : f32
      %113 = vector.broadcast %cst_76 : f32 to vector<2x8x32xf32>
      %c0_77 = arith.constant 0 : index
      %c0_78 = arith.constant 0 : index
      %c0_79 = arith.constant 0 : index
      %114 = vector.load %arg14[%c0_77, %c0_78, %c0_79] : memref<2x8x32xf32, #tpu.memory_space<vmem>>, vector<2x8x32xf32>
      tpu.vector_store %arg14[%c0_77, %c0_78, %c0_79], %113 {strides = array<i32>} : memref<2x8x32xf32, #tpu.memory_space<vmem>>, vector<2x8x32xf32>,
    } else {
    }
    %c0 = arith.constant 0 : index
    %c0_1 = arith.constant 0 : index
    %c0_2 = arith.constant 0 : index
    %3 = vector.load %arg2[%c0, %c0_1, %c0_2] : memref<1x32x28xf32, #tpu.memory_space<vmem>>, vector<1x32x28xf32>
    %4 = vector.shape_cast %3 : vector<1x32x28xf32> to vector<32x28xf32>
    %c0_3 = arith.constant 0 : index
    %c0_4 = arith.constant 0 : index
    %5 = vector.load %arg3[%c0_3, %c0_4] : memref<28x32xf32, #tpu.memory_space<vmem>>, vector<28x32xf32>
    %cst = arith.constant dense<0.000000e+00> : vector<32x32xf32>
    %6 = tpu.matmul %4, %5, %cst {dimension_numbers = #tpu.dot_dimension_numbers<[1], [0], [0], [1], [0, 0, 1, 1], [], []>} : vector<32x28xf32>, vector<28x32xf32>, vector<32x32xf32> -> vector<32x32xf32>
    %c0_5 = arith.constant 0 : index
    %c0_6 = arith.constant 0 : index
    %7 = vector.load %arg5[%c0_5, %c0_6] : memref<1x32xf32, #tpu.memory_space<vmem>>, vector<1x32xf32>
    %8 = vector.broadcast %7 : vector<1x32xf32> to vector<32x32xf32>
    %9 = arith.addf %6, %8 : vector<32x32xf32>
    %c0_7 = arith.constant 0 : index
    %c0_8 = arith.constant 0 : index
    %10 = vector.load %arg12[%c0_7, %c0_8] : memref<32x32xf32, #tpu.memory_space<vmem>>, vector<32x32xf32>
    tpu.vector_store %arg12[%c0_7, %c0_8], %9 {strides = array<i32>} : memref<32x32xf32, #tpu.memory_space<vmem>>, vector<32x32xf32>,
    %c0_9 = arith.constant 0 : index
    %c0_10 = arith.constant 0 : index
    %11 = vector.load %arg4[%c0_9, %c0_10] : memref<32x32xf32, #tpu.memory_space<vmem>>, vector<32x32xf32>
    %c0_11 = arith.constant 0 : index
    %c0_12 = arith.constant 0 : index
    %c0_13 = arith.constant 0 : index
    %12 = vector.load %arg14[%c0_11, %c0_12, %c0_13] : memref<2x8x32xf32, #tpu.memory_space<vmem>>, vector<1x8x32xf32>
    %13 = vector.shape_cast %12 : vector<1x8x32xf32> to vector<8x32xf32>
    %c0_i32_14 = arith.constant 0 : i32
    %c8_i32 = arith.constant 8 : i32
    %14 = arith.muli %c0_i32_14, %c8_i32 : i32
    %15 = tpu.assume_multiple %14, 8 : i32
    %c0_i32_15 = arith.constant 0 : i32
    %16 = arith.addi %15, %c0_i32_15 : i32
    %17 = tpu.assume_multiple %16, 8 : i32
    %18 = arith.index_cast %17 : i32 to index
    %c0_16 = arith.constant 0 : index
    %19 = vector.load %arg12[%18, %c0_16] : memref<32x32xf32, #tpu.memory_space<vmem>>, vector<8x32xf32>
    %cst_17 = arith.constant dense<0.000000e+00> : vector<8x32xf32>
    %20 = tpu.matmul %13, %11, %cst_17 {dimension_numbers = #tpu.dot_dimension_numbers<[1], [0], [0], [1], [0, 0, 1, 1], [], []>} : vector<8x32xf32>, vector<32x32xf32>, vector<8x32xf32> -> vector<8x32xf32>
    %21 = arith.addf %19, %20 : vector<8x32xf32>
    %22 = math.tanh %21 : vector<8x32xf32>
    %23 = arith.index_cast %17 : i32 to index
    %c0_18 = arith.constant 0 : index
    %24 = vector.load %arg13[%23, %c0_18] : memref<32x32xf32, #tpu.memory_space<vmem>>, vector<8x32xf32>
    tpu.vector_store %arg13[%23, %c0_18], %22 {strides = array<i32>} : memref<32x32xf32, #tpu.memory_space<vmem>>, vector<8x32xf32>,
    %c1_i32 = arith.constant 1 : i32
    %c8_i32_19 = arith.constant 8 : i32
    %25 = arith.muli %c1_i32, %c8_i32_19 : i32
    %26 = tpu.assume_multiple %25, 8 : i32
    %c0_i32_20 = arith.constant 0 : i32
    %27 = arith.addi %26, %c0_i32_20 : i32
    %28 = tpu.assume_multiple %27, 8 : i32
    %29 = arith.index_cast %28 : i32 to index
    %c0_21 = arith.constant 0 : index
    %30 = vector.load %arg12[%29, %c0_21] : memref<32x32xf32, #tpu.memory_space<vmem>>, vector<8x32xf32>
    %cst_22 = arith.constant dense<0.000000e+00> : vector<8x32xf32>
    %31 = tpu.matmul %22, %11, %cst_22 {dimension_numbers = #tpu.dot_dimension_numbers<[1], [0], [0], [1], [0, 0, 1, 1], [], []>} : vector<8x32xf32>, vector<32x32xf32>, vector<8x32xf32> -> vector<8x32xf32>
    %32 = arith.addf %30, %31 : vector<8x32xf32>
    %33 = math.tanh %32 : vector<8x32xf32>
    %34 = arith.index_cast %28 : i32 to index
    %c0_23 = arith.constant 0 : index
    %35 = vector.load %arg13[%34, %c0_23] : memref<32x32xf32, #tpu.memory_space<vmem>>, vector<8x32xf32>
    tpu.vector_store %arg13[%34, %c0_23], %33 {strides = array<i32>} : memref<32x32xf32, #tpu.memory_space<vmem>>, vector<8x32xf32>,
    %c2_i32 = arith.constant 2 : i32
    %c8_i32_24 = arith.constant 8 : i32
    %36 = arith.muli %c2_i32, %c8_i32_24 : i32
    %37 = tpu.assume_multiple %36, 8 : i32
    %c0_i32_25 = arith.constant 0 : i32
    %38 = arith.addi %37, %c0_i32_25 : i32
    %39 = tpu.assume_multiple %38, 8 : i32
    %40 = arith.index_cast %39 : i32 to index
    %c0_26 = arith.constant 0 : index
    %41 = vector.load %arg12[%40, %c0_26] : memref<32x32xf32, #tpu.memory_space<vmem>>, vector<8x32xf32>
    %cst_27 = arith.constant dense<0.000000e+00> : vector<8x32xf32>
    %42 = tpu.matmul %33, %11, %cst_27 {dimension_numbers = #tpu.dot_dimension_numbers<[1], [0], [0], [1], [0, 0, 1, 1], [], []>} : vector<8x32xf32>, vector<32x32xf32>, vector<8x32xf32> -> vector<8x32xf32>
    %43 = arith.addf %41, %42 : vector<8x32xf32>
    %44 = math.tanh %43 : vector<8x32xf32>
    %45 = arith.index_cast %39 : i32 to index
    %c0_28 = arith.constant 0 : index
    %46 = vector.load %arg13[%45, %c0_28] : memref<32x32xf32, #tpu.memory_space<vmem>>, vector<8x32xf32>
    tpu.vector_store %arg13[%45, %c0_28], %44 {strides = array<i32>} : memref<32x32xf32, #tpu.memory_space<vmem>>, vector<8x32xf32>,
    %c3_i32 = arith.constant 3 : i32
    %c8_i32_29 = arith.constant 8 : i32
    %47 = arith.muli %c3_i32, %c8_i32_29 : i32
    %48 = tpu.assume_multiple %47, 8 : i32
    %c0_i32_30 = arith.constant 0 : i32
    %49 = arith.addi %48, %c0_i32_30 : i32
    %50 = tpu.assume_multiple %49, 8 : i32
    %51 = arith.index_cast %50 : i32 to index
    %c0_31 = arith.constant 0 : index
    %52 = vector.load %arg12[%51, %c0_31] : memref<32x32xf32, #tpu.memory_space<vmem>>, vector<8x32xf32>
    %cst_32 = arith.constant dense<0.000000e+00> : vector<8x32xf32>
    %53 = tpu.matmul %44, %11, %cst_32 {dimension_numbers = #tpu.dot_dimension_numbers<[1], [0], [0], [1], [0, 0, 1, 1], [], []>} : vector<8x32xf32>, vector<32x32xf32>, vector<8x32xf32> -> vector<8x32xf32>
    %54 = arith.addf %52, %53 : vector<8x32xf32>
    %55 = math.tanh %54 : vector<8x32xf32>
    %56 = arith.index_cast %50 : i32 to index
    %c0_33 = arith.constant 0 : index
    %57 = vector.load %arg13[%56, %c0_33] : memref<32x32xf32, #tpu.memory_space<vmem>>, vector<8x32xf32>
    tpu.vector_store %arg13[%56, %c0_33], %55 {strides = array<i32>} : memref<32x32xf32, #tpu.memory_space<vmem>>, vector<8x32xf32>,
    %c4_i32 = arith.constant 4 : i32
    %c0_34 = arith.constant 0 : index
    %c0_35 = arith.constant 0 : index
    %c0_36 = arith.constant 0 : index
    %58 = vector.load %arg14[%c0_34, %c0_35, %c0_36] : memref<2x8x32xf32, #tpu.memory_space<vmem>>, vector<1x8x32xf32>
    %59 = vector.shape_cast %58 : vector<1x8x32xf32> to vector<8x32xf32>
    %60 = vector.shape_cast %55 : vector<8x32xf32> to vector<1x8x32xf32>
    tpu.vector_store %arg14[%c0_34, %c0_35, %c0_36], %60 {strides = array<i32>} : memref<2x8x32xf32, #tpu.memory_space<vmem>>, vector<1x8x32xf32>,
    %c0_37 = arith.constant 0 : index
    %c0_38 = arith.constant 0 : index
    %61 = vector.load %arg13[%c0_37, %c0_38] : memref<32x32xf32, #tpu.memory_space<vmem>>, vector<32x32xf32>
    %c0_39 = arith.constant 0 : index
    %c0_40 = arith.constant 0 : index
    %62 = vector.load %arg6[%c0_39, %c0_40] : memref<32x32xf32, #tpu.memory_space<vmem>>, vector<32x32xf32>
    %cst_41 = arith.constant dense<0.000000e+00> : vector<32x32xf32>
    %63 = tpu.matmul %61, %62, %cst_41 {dimension_numbers = #tpu.dot_dimension_numbers<[1], [0], [0], [1], [0, 0, 1, 1], [], []>} : vector<32x32xf32>, vector<32x32xf32>, vector<32x32xf32> -> vector<32x32xf32>
    %c0_42 = arith.constant 0 : index
    %c0_43 = arith.constant 0 : index
    %64 = vector.load %arg8[%c0_42, %c0_43] : memref<1x32xf32, #tpu.memory_space<vmem>>, vector<1x32xf32>
    %65 = vector.broadcast %64 : vector<1x32xf32> to vector<32x32xf32>
    %66 = arith.addf %63, %65 : vector<32x32xf32>
    %c0_44 = arith.constant 0 : index
    %c0_45 = arith.constant 0 : index
    %67 = vector.load %arg12[%c0_44, %c0_45] : memref<32x32xf32, #tpu.memory_space<vmem>>, vector<32x32xf32>
    tpu.vector_store %arg12[%c0_44, %c0_45], %66 {strides = array<i32>} : memref<32x32xf32, #tpu.memory_space<vmem>>, vector<32x32xf32>,
    %c0_46 = arith.constant 0 : index
    %c0_47 = arith.constant 0 : index
    %68 = vector.load %arg7[%c0_46, %c0_47] : memref<32x32xf32, #tpu.memory_space<vmem>>, vector<32x32xf32>
    %c1 = arith.constant 1 : index
    %c0_48 = arith.constant 0 : index
    %c0_49 = arith.constant 0 : index
    %69 = vector.load %arg14[%c1, %c0_48, %c0_49] : memref<2x8x32xf32, #tpu.memory_space<vmem>>, vector<1x8x32xf32>
    %70 = vector.shape_cast %69 : vector<1x8x32xf32> to vector<8x32xf32>
    %c0_i32_50 = arith.constant 0 : i32
    %c8_i32_51 = arith.constant 8 : i32
    %71 = arith.muli %c0_i32_50, %c8_i32_51 : i32
    %72 = tpu.assume_multiple %71, 8 : i32
    %c0_i32_52 = arith.constant 0 : i32
    %73 = arith.addi %72, %c0_i32_52 : i32
    %74 = tpu.assume_multiple %73, 8 : i32
    %75 = arith.index_cast %74 : i32 to index
    %c0_53 = arith.constant 0 : index
    %76 = vector.load %arg12[%75, %c0_53] : memref<32x32xf32, #tpu.memory_space<vmem>>, vector<8x32xf32>
    %cst_54 = arith.constant dense<0.000000e+00> : vector<8x32xf32>
    %77 = tpu.matmul %70, %68, %cst_54 {dimension_numbers = #tpu.dot_dimension_numbers<[1], [0], [0], [1], [0, 0, 1, 1], [], []>} : vector<8x32xf32>, vector<32x32xf32>, vector<8x32xf32> -> vector<8x32xf32>
    %78 = arith.addf %76, %77 : vector<8x32xf32>
    %79 = math.tanh %78 : vector<8x32xf32>
    %c1_i32_55 = arith.constant 1 : i32
    %c8_i32_56 = arith.constant 8 : i32
    %80 = arith.muli %c1_i32_55, %c8_i32_56 : i32
    %81 = tpu.assume_multiple %80, 8 : i32
    %c0_i32_57 = arith.constant 0 : i32
    %82 = arith.addi %81, %c0_i32_57 : i32
    %83 = tpu.assume_multiple %82, 8 : i32
    %84 = arith.index_cast %83 : i32 to index
    %c0_58 = arith.constant 0 : index
    %85 = vector.load %arg12[%84, %c0_58] : memref<32x32xf32, #tpu.memory_space<vmem>>, vector<8x32xf32>
    %cst_59 = arith.constant dense<0.000000e+00> : vector<8x32xf32>
    %86 = tpu.matmul %79, %68, %cst_59 {dimension_numbers = #tpu.dot_dimension_numbers<[1], [0], [0], [1], [0, 0, 1, 1], [], []>} : vector<8x32xf32>, vector<32x32xf32>, vector<8x32xf32> -> vector<8x32xf32>
    %87 = arith.addf %85, %86 : vector<8x32xf32>
    %88 = math.tanh %87 : vector<8x32xf32>
    %c2_i32_60 = arith.constant 2 : i32
    %c8_i32_61 = arith.constant 8 : i32
    %89 = arith.muli %c2_i32_60, %c8_i32_61 : i32
    %90 = tpu.assume_multiple %89, 8 : i32
    %c0_i32_62 = arith.constant 0 : i32
    %91 = arith.addi %90, %c0_i32_62 : i32
    %92 = tpu.assume_multiple %91, 8 : i32
    %93 = arith.index_cast %92 : i32 to index
    %c0_63 = arith.constant 0 : index
    %94 = vector.load %arg12[%93, %c0_63] : memref<32x32xf32, #tpu.memory_space<vmem>>, vector<8x32xf32>
    %cst_64 = arith.constant dense<0.000000e+00> : vector<8x32xf32>
    %95 = tpu.matmul %88, %68, %cst_64 {dimension_numbers = #tpu.dot_dimension_numbers<[1], [0], [0], [1], [0, 0, 1, 1], [], []>} : vector<8x32xf32>, vector<32x32xf32>, vector<8x32xf32> -> vector<8x32xf32>
    %96 = arith.addf %94, %95 : vector<8x32xf32>
    %97 = math.tanh %96 : vector<8x32xf32>
    %c3_i32_65 = arith.constant 3 : i32
    %c8_i32_66 = arith.constant 8 : i32
    %98 = arith.muli %c3_i32_65, %c8_i32_66 : i32
    %99 = tpu.assume_multiple %98, 8 : i32
    %c0_i32_67 = arith.constant 0 : i32
    %100 = arith.addi %99, %c0_i32_67 : i32
    %101 = tpu.assume_multiple %100, 8 : i32
    %102 = arith.index_cast %101 : i32 to index
    %c0_68 = arith.constant 0 : index
    %103 = vector.load %arg12[%102, %c0_68] : memref<32x32xf32, #tpu.memory_space<vmem>>, vector<8x32xf32>
    %cst_69 = arith.constant dense<0.000000e+00> : vector<8x32xf32>
    %104 = tpu.matmul %97, %68, %cst_69 {dimension_numbers = #tpu.dot_dimension_numbers<[1], [0], [0], [1], [0, 0, 1, 1], [], []>} : vector<8x32xf32>, vector<32x32xf32>, vector<8x32xf32> -> vector<8x32xf32>
    %105 = arith.addf %103, %104 : vector<8x32xf32>
    %106 = math.tanh %105 : vector<8x32xf32>
    %c4_i32_70 = arith.constant 4 : i32
    %c1_71 = arith.constant 1 : index
    %c0_72 = arith.constant 0 : index
    %c0_73 = arith.constant 0 : index
    %107 = vector.load %arg14[%c1_71, %c0_72, %c0_73] : memref<2x8x32xf32, #tpu.memory_space<vmem>>, vector<1x8x32xf32>
    %108 = vector.shape_cast %107 : vector<1x8x32xf32> to vector<8x32xf32>
    %109 = vector.shape_cast %106 : vector<8x32xf32> to vector<1x8x32xf32>
    tpu.vector_store %arg14[%c1_71, %c0_72, %c0_73], %109 {strides = array<i32>} : memref<2x8x32xf32, #tpu.memory_space<vmem>>, vector<1x8x32xf32>,
    %c1_i32_74 = arith.constant 1 : i32
    %110 = arith.cmpi eq, %arg1, %c1_i32_74 : i32
    %111 = arith.extui %110 : i1 to i32
    %c0_i32_75 = arith.constant 0 : i32
    %112 = arith.cmpi ne, %111, %c0_i32_75 : i32
    scf.if %112 {
      %c0_76 = arith.constant 0 : index
      %c0_77 = arith.constant 0 : index
      %113 = vector.load %arg9[%c0_76, %c0_77] : memref<32x10xf32, #tpu.memory_space<vmem>>, vector<32x10xf32>
      %cst_78 = arith.constant dense<0.000000e+00> : vector<8x10xf32>
      %114 = tpu.matmul %106, %113, %cst_78 {dimension_numbers = #tpu.dot_dimension_numbers<[1], [0], [0], [1], [0, 0, 1, 1], [], []>} : vector<8x32xf32>, vector<32x10xf32>, vector<8x10xf32> -> vector<8x10xf32>
      %c0_79 = arith.constant 0 : index
      %c0_80 = arith.constant 0 : index
      %115 = vector.load %arg10[%c0_79, %c0_80] : memref<1x10xf32, #tpu.memory_space<vmem>>, vector<1x10xf32>
      %116 = vector.broadcast %115 : vector<1x10xf32> to vector<8x10xf32>
      %117 = arith.addf %114, %116 : vector<8x10xf32>
      %c0_81 = arith.constant 0 : index
      %c0_82 = arith.constant 0 : index
      %118 = vector.load %arg11[%c0_81, %c0_82] : memref<8x10xf32, #tpu.memory_space<vmem>>, vector<8x10xf32>
      tpu.vector_store %arg11[%c0_81, %c0_82], %117 {strides = array<i32>} : memref<8x10xf32, #tpu.memory_space<vmem>>, vector<8x10xf32>,
    } else {
    }
    return
  }
  func.func @transform_0(%arg0: i32, %arg1: i32) -> (i32, i32, i32) {
    %c0_i32 = arith.constant 0 : i32
    %c0_i32_0 = arith.constant 0 : i32
    return %arg0, %arg1, %c0_i32 : i32, i32, i32
  }
  func.func @transform_1(%arg0: i32, %arg1: i32) -> (i32, i32) {
    %c0_i32 = arith.constant 0 : i32
    %c0_i32_0 = arith.constant 0 : i32
    %c0_i32_1 = arith.constant 0 : i32
    return %c0_i32, %c0_i32_0 : i32, i32
  }
  func.func @transform_2(%arg0: i32, %arg1: i32) -> (i32, i32) {
    %c0_i32 = arith.constant 0 : i32
    %c0_i32_0 = arith.constant 0 : i32
    %c0_i32_1 = arith.constant 0 : i32
    return %c0_i32, %c0_i32_0 : i32, i32
  }
  func.func @transform_3(%arg0: i32, %arg1: i32) -> (i32, i32) {
    %c0_i32 = arith.constant 0 : i32
    %c0_i32_0 = arith.constant 0 : i32
    %c0_i32_1 = arith.constant 0 : i32
    return %c0_i32, %c0_i32_0 : i32, i32
  }
  func.func @transform_4(%arg0: i32, %arg1: i32) -> (i32, i32) {
    %c0_i32 = arith.constant 0 : i32
    %c0_i32_0 = arith.constant 0 : i32
    %c0_i32_1 = arith.constant 0 : i32
    return %c0_i32, %c0_i32_0 : i32, i32
  }
  func.func @transform_5(%arg0: i32, %arg1: i32) -> (i32, i32) {
    %c0_i32 = arith.constant 0 : i32
    %c0_i32_0 = arith.constant 0 : i32
    %c0_i32_1 = arith.constant 0 : i32
    return %c0_i32, %c0_i32_0 : i32, i32
  }
  func.func @transform_6(%arg0: i32, %arg1: i32) -> (i32, i32) {
    %c0_i32 = arith.constant 0 : i32
    %c0_i32_0 = arith.constant 0 : i32
    %c0_i32_1 = arith.constant 0 : i32
    return %c0_i32, %c0_i32_0 : i32, i32
  }
  func.func @transform_7(%arg0: i32, %arg1: i32) -> (i32, i32) {
    %c0_i32 = arith.constant 0 : i32
    %c0_i32_0 = arith.constant 0 : i32
    %c0_i32_1 = arith.constant 0 : i32
    return %c0_i32, %c0_i32_0 : i32, i32
  }
  func.func @transform_8(%arg0: i32, %arg1: i32) -> (i32, i32) {
    %c0_i32 = arith.constant 0 : i32
    %c0_i32_0 = arith.constant 0 : i32
    %c0_i32_1 = arith.constant 0 : i32
    return %c0_i32, %c0_i32_0 : i32, i32
  }
  func.func @transform_9(%arg0: i32, %arg1: i32) -> (i32, i32) {
    %c0_i32 = arith.constant 0 : i32
    %c0_i32_0 = arith.constant 0 : i32
    return %arg0, %c0_i32 : i32, i32
  }
}

</mosaic_0001>

<bundles_post_ra>
// kernel: rnn_forward.1
= control target key start
LH: loop header
LB: loop body
LE: loop exit
PB: predicated region body
PF: predicated region fallthrough
CT: control target
= control target key end

     0   :  { %s1812_s30 = smov 0   ;;  %s1814_s10 = smov 0   ;;  %s1996_s0 = inlined_call_operand.vmem [shape: f32[1,64,28], index: 0, kind: input, shape index: {}]   ;;  %s1997_s1 = inlined_call_operand.vmem [shape: f32[28,32], index: 1, kind: input, shape index: {}]   ;;  %s1998_s2 = inlined_call_operand.vmem [shape: f32[32,32], index: 2, kind: input, shape index: {}]   ;;  %s1999_s3 = inlined_call_operand.vmem [shape: f32[1,32], index: 3, kind: input, shape index: {}]   ;;  %s2000_s4 = inlined_call_operand.vmem [shape: f32[32,32], index: 4, kind: input, shape index: {}]   ;;  %s2001_s5 = inlined_call_operand.vmem [shape: f32[32,32], index: 5, kind: input, shape index: {}]   ;;  %s2002_s6 = inlined_call_operand.vmem [shape: f32[1,32], index: 6, kind: input, shape index: {}]   ;;  %s2003_s7 = inlined_call_operand.vmem [shape: f32[32,10], index: 7, kind: input, shape index: {}]   ;;  %s2004_s8 = inlined_call_operand.vmem [shape: f32[1,10], index: 8, kind: input, shape index: {}]   ;;  %s2005_s9 = inlined_call_operand.vmem [shape: f32[8,10], index: 9, kind: output, shape index: {}]  }
   0x1   :  { %s1816_s11 = smov 0  }
   0x2 LB: > { %s28_s12 = sadd.s32 1, %s1748_s10  ;;  %p1393_p0 = scmp.ge.s32.totalorder %s1752_s11, 1  ;;  %s1752_s11 = sphi %s1816_s11, %s19_s11   ;;  %s1748_s10 = sphi %s1814_s10, %s2009_s10   ;;  %s1744_s30 = sphi %s1812_s30, %s2008_s30  }
   0x3   : > { %p29_p1 = scmp.ge.s32.totalorder %s28_s12, 2  ;;  %p306_p2 = scmp.lt.s32.totalorder %s1752_s11, 3 }
   0x5   : > { %s2011_s12 = smov (%p29_p1, %s28_s12), 0  ;;  %p307_p3 = pnand %p1393_p0, %p306_p2 }
   0x6   : > { %s1394_s13 = sshll.u32 (!%p307_p3), %s1744_s30, 2  ;;  %p1396_p5 = scmp.ne.s32.totalorder (!%p307_p3), %s1744_s30, 0 }
   0x7   : > { %310 = sbr.rel (%p307_p3) target bundleno = 1845 (0x735), region = 56  ;;  %p348_p4 = scmp.lt.s32.totalorder (!%p307_p3), %s1394_s13, 7 }
   0xe   : > { %s2013_s13 = smov (!%p348_p4, %s1394_s13), 7  ;;  %362 = sbr.rel (%p1396_p5) target bundleno = 21 (0x15), region = 60 }
   0xf   : > { %s1395_s14 = sshll.u32 %s2013_s13, 3  ;;  %vm363_vm0 = vcmask (!%p1396_p5), 261120   ;;  %v1754_v0 = vmov (!%p1396_p5), 0.0  }
  0x10   : > { %s1836_s17 = scalar_lea.vmem %s1996_s0, %s1395_s14  ;;  %364 = vst.msk [vmem:[#allocation4] sm:$0xff] (!%p1396_p5), %vm363_vm0, %v1754_v0  ;;  %365 = vst.msk [vmem:[#allocation4 + $0x8] sm:$0xff] (!%p1396_p5), %vm363_vm0, %v1754_v0 }
  0x15 PF: > { %v370_v1 = vld [vmem:[%s1997_s1] sm:$0xff]  ;;  %v371_v2 = vld [vmem:[%s1997_s1 + $0x8] sm:$0xff]  ;;  %v372_v3 = vld [vmem:[%s1997_s1 + $0x10] sm:$0xff]  ;;  %vm394_vm1 = vcmask 1043456   ;;  %vm381_vm2 = vcmask 228352   ;;  %vm1755_vm3 = vmmov 1  }
  0x16   : > { %v1610_v4 = vpack.c.bf16 %v371_v2, %v370_v1  ;;  %v373_v5 = vld [vmem:[%s1997_s1 + $0x18] sm:$0xf]  ;;  %v366_v6 = vld [vmem:[%s1836_s17] sm:$0xff]  ;;  %vm1852_vm4 = vmpackc.low %vm394_vm1, %vm1755_vm3  ;;  %v1756_v9 = vmov 0.0|0.0   ;;  %vm1757_vm5 = vmmov 0   ;;  %v1758_v15 = vmov 0.0  }
  0x17   : > { %v1614_v7 = vpack.c.bf16 %v373_v5, %v372_v3  ;;  %1491 = vmatprep.mubr.msk.f32.mxu0 %vm381_vm2, %v366_v6  ;;  %1620 = vmatprep.subr.bf16.mxu1 %v1756_v9  ;;  %v488_v10 = vld [vmem:[%s1998_s2] sm:$0xff]  ;;  %v489_v11 = vld [vmem:[%s1998_s2 + $0x8] sm:$0xff]  ;;  %v490_v13 = vld [vmem:[%s1998_s2 + $0x10] sm:$0xff]  ;;  %vm483_vm6 = vcmask 261120   ;;  %p1416_p6 = scmp.ne.s32.totalorder %s1744_s30, 1 }
  0x18   : > { %1611 = vmatprep.subr.bf16.mxu0 %v1610_v4  ;;  %v1621_v12 = vpack.c.bf16 %v489_v11, %v488_v10  ;;  %v491_v14 = vld [vmem:[%s1998_s2 + $0x18] sm:$0xff]  ;;  %1505 = vmatprep.mubr.msk.f32.mxu1 %vm1757_vm5, %v1758_v15  ;;  %v367_v17 = vld [vmem:[%s1836_s17 + $0x8] sm:$0xff]  ;;  %v492_v18 = vld [vmem:[#allocation4] sm:$0xff]  ;;  %vm1760_vm7 = vmmov (!%p1416_p6), 0   ;;  %vm1323_vm8 = vcmask (!%p1416_p6), 80896  }
  0x19   : > { %1613 = vmatpush3.bf16.msra.mxu0 %v1610_v4  ;;  %v1624_v16 = vpack.c.bf16 %v491_v14, %v490_v13  ;;  %v368_v19 = vld [vmem:[%s1836_s17 + $0x10] sm:$0xff]  ;;  %v369_v20 = vld [vmem:[%s1836_s17 + $0x18] sm:$0xff]  ;;  %v1397_v21 = vld [vmem:[%s1999_s3] ss:$0 sm:$0xff] }
  0x1a   : > { %1616 = vmatprep.subr.msk.bf16.mxu0 %vm1852_vm4, %v1614_v7  ;;  %1622 = vmatpush3.bf16.msra.mxu1 %v1621_v12  ;;  %v812_v35 = vld [vmem:[%s2000_s4] sm:$0xff]  ;;  %v813_v36 = vld [vmem:[%s2000_s4 + $0x8] sm:$0xff]  ;;  %v814_v42 = vld [vmem:[%s2000_s4 + $0x10] sm:$0xff] }
  0x1b   : > { %1623 = vmatprep.subr.bf16.mxu1 %v1756_v9  ;;  %v1644_v37 = vpack.c.bf16 %v813_v36, %v812_v35  ;;  %v815_v43 = vld [vmem:[%s2000_s4 + $0x18] sm:$0xff]  ;;  %v924_v48 = vld [vmem:[%s2001_s5] sm:$0xff]  ;;  %v925_v49 = vld [vmem:[%s2001_s5 + $0x8] sm:$0xff]  ;;  %v1759_v35 = vmov (!%p1416_p6), 0.0|0.0  }
  0x1c   : > { %v1648_v44 = vpack.c.bf16 %v815_v43, %v814_v42  ;;  %v1653_v50 = vpack.c.bf16 %v925_v49, %v924_v48  ;;  %v926_v51 = vld [vmem:[%s2001_s5 + $0x10] sm:$0xff]  ;;  %v927_v52 = vld [vmem:[%s2001_s5 + $0x18] sm:$0xff]  ;;  %v1407_v58 = vld [vmem:[%s2002_s6] ss:$0 sm:$0xff] }
  0x1d   : > { %1619 = vmatpush3.bf16.msk.msra.mxu0 %vm1852_vm4, %v1614_v7  ;;  %v1656_v53 = vpack.c.bf16 %v927_v52, %v926_v51  ;;  %v929_v0 = vld [vmem:[#allocation4 + $0x8] sm:$0xff] }
  0x1e   : > { %1625 = vmatpush3.bf16.msra.mxu1 %v1624_v16  ;;  %1626 = vmatprep.subr.bf16.mxu0 %v1756_v9 }
  0x1f   : > { %1632 = vmatprep.subr.bf16.mxu1 %v1756_v9 }
  0x20   : > { %1492 = vmatmul.mubr.msk.f32.vlgmr.msra.gmra.mrb[0].mxu0 %vm381_vm2, %v367_v17 }
  0x21   : > { %1506 = vmatmul.mubr.msk.f32.vlgmr.msra.gmra.mrb[0].mxu1 %vm483_vm6, %v492_v18  ;;  %1628 = vmatpush3.bf16.msra.mxu0 %v1621_v12 }
  0x22   : > { %1629 = vmatprep.subr.bf16.mxu0 %v1756_v9  ;;  %1634 = vmatpush3.bf16.msra.mxu1 %v1621_v12 }
  0x23   : > { %1635 = vmatprep.subr.bf16.mxu1 %v1756_v9  ;;  %1527 = vmatprep.mubr.msk.f32.mxu1 %vm1757_vm5, %v1758_v15 }
  0x24   : > { %1494 = vmatprep.mubr.msk.f32.mxu0 %vm381_vm2, %v368_v19 }
  0x25   : > { %1631 = vmatpush3.bf16.msra.mxu0 %v1624_v16 }
  0x26   : > { %1637 = vmatpush3.bf16.msra.mxu1 %v1624_v16  ;;  %1638 = vmatprep.subr.bf16.mxu0 %v1756_v9 }
  0x27   : > { %1495 = vmatmul.mubr.msk.f32.gmra.mrb[2].mxu0 %vm381_vm2, %v369_v20  ;;  %1645 = vmatprep.subr.bf16.mxu1 %v1644_v37 }
  0x28   : > { %1516 = vmatprep.mubr.msk.f32.mxu0 %vm1757_vm5, %v1758_v15 }
  0xf3   : > { %v1493_v22 = vpop.f32.mrb[0].mxu0 }
  0xf4   : > { %v470_v23 = vadd.f32 %v1493_v22, %v1397_v21  ;;  %v464_v24 = vpop.f32.mrb[1].mxu0  ;;  %v563_v25 = vpop.f32.mrb[0].mxu1 }
  0xf5   : > { %v465_v26 = vadd.f32 %v1397_v21, %v464_v24  ;;  %v1507_v27 = vpop.f32.mrb[1].mxu1 }
  0xf6   : > { %485 = vst.msk [vmem:[#allocation2 + $0x8] sm:$0xff] %vm483_vm6, %v470_v23 }
  0xf7   : > { %484 = vst.msk [vmem:[#allocation2] sm:$0xff] %vm483_vm6, %v465_v26 }
  0xfa   : > { %v1496_v31 = vpop.f32.mrb[2].mxu0 }
  0xfb   : > { %v480_v32 = vadd.f32 %v1496_v31, %v1397_v21  ;;  %v474_v33 = vpop.f32.mrb[3].mxu0 }
  0xfc   : > { %v475_v34 = vadd.f32 %v1397_v21, %v474_v33  ;;  %v1240_v33 = vld [vmem:[%s2003_s7 + $0x8] sm:$0xff] (!%p1416_p6) }
  0xfd   : > { %487 = vst.msk [vmem:[#allocation2 + $0x18] sm:$0xff] %vm483_vm6, %v480_v32  ;;  %v571_v38 = vld [vmem:[#allocation2 + $0x8] sm:$0xff]  ;;  %v1239_v32 = vld [vmem:[%s2003_s7] sm:$0xff] (!%p1416_p6) }
  0xfe   : > { %v493_v28 = vld [vmem:[#allocation2] sm:$0xff]  ;;  %486 = vst.msk [vmem:[#allocation2 + $0x10] sm:$0xff] %vm483_vm6, %v475_v34  ;;  %v1241_v34 = vld [vmem:[%s2003_s7 + $0x10] sm:$0xff] (!%p1416_p6)  ;;  %v1677_v36 = vpack.c.bf16 (!%p1416_p6), %v1240_v33, %v1239_v32 }
  0xff   : > { %v567_v29 = vadd.f32 %v563_v25, %v493_v28 }
 0x101   : > { %1714 = vtanh.f32 %v567_v29 }
 0x104   : > { %v729_v2 = vld [vmem:[#allocation2 + $0x18] sm:$0xff] }
 0x105   : > { %v650_v54 = vld [vmem:[#allocation2 + $0x10] sm:$0xff] }
 0x10b   : > { %v1715_v30 = vpop.eup %1714 }
 0x10c   : > { %569 = vst.msk [vmem:[#allocation3] sm:$0xff] %vm483_vm6, %v1715_v30  ;;  %1517 = vmatmul.mubr.msk.f32.vlgmr.msra.gmra.mrb[4].mxu0 %vm483_vm6, %v1715_v30 }
 0x10d   : > { %1640 = vmatpush3.bf16.msra.mxu0 %v1621_v12  ;;  %1538 = vmatprep.mubr.msk.f32.mxu0 %vm1757_vm5, %v1758_v15 }
 0x10e   : > { %1641 = vmatprep.subr.bf16.mxu0 %v1756_v9 }
 0x111   : > { %1643 = vmatpush3.bf16.msra.mxu0 %v1624_v16 }
 0x112   : > { %1652 = vmatprep.subr.bf16.mxu0 %v1756_v9 }
 0x113   : > { %v808_v46 = vld [vmem:[#allocation3] sm:$0xff] }
 0x1df   : > { %v641_v39 = vpop.f32.mrb[4].mxu0 }
 0x1e0   : > { %v645_v40 = vadd.f32 %v641_v39, %v571_v38  ;;  %v1518_v41 = vpop.f32.mrb[5].mxu0  ;;  %v1761_v38 = vmov (!%p1416_p6), 0.0  }
 0x1e2   : > { %1716 = vtanh.f32 %v645_v40  ;;  %v1417_v40 = vld [vmem:[%s2004_s8] ss:$0 sm:$0xff] (!%p1416_p6) }
 0x1ec   : > { %v1717_v45 = vpop.eup %1716 }
 0x1ed   : > { %648 = vst.msk [vmem:[#allocation3 + $0x8] sm:$0xff] %vm483_vm6, %v1717_v45  ;;  %1528 = vmatmul.mubr.msk.f32.vlgmr.msra.gmra.mrb[2].mxu1 %vm483_vm6, %v1717_v45 }
 0x1ee   : > { %1647 = vmatpush3.bf16.msra.mxu1 %v1644_v37  ;;  %1549 = vmatprep.mubr.msk.f32.mxu1 %vm483_vm6, %v808_v46  ;;  %v1242_v37 = vld [vmem:[%s2003_s7 + $0x18] sm:$0xff] (!%p1416_p6) }
 0x1ef   : > { %1649 = vmatprep.subr.bf16.mxu1 %v1648_v44  ;;  %v1680_v39 = vpack.c.bf16 (!%p1416_p6), %v1242_v37, %v1241_v34 }
 0x1f2   : > { %1651 = vmatpush3.bf16.msra.mxu1 %v1648_v44 }
 0x1f3   : > { %1658 = vmatprep.subr.bf16.mxu1 %v1756_v9 }
 0x1f4   : > { %v809_v47 = vld [vmem:[#allocation3 + $0x8] sm:$0xff] }
 0x1f5   : > { %1550 = vmatmul.mubr.msk.f32.vlgmr.msra.gmra.mrb[4].mxu1 %vm483_vm6, %v809_v47 }
 0x1f6   : > { %1660 = vmatpush3.bf16.msra.mxu1 %v1653_v50 }
 0x1f7   : > { %1661 = vmatprep.subr.bf16.mxu1 %v1756_v9 }
 0x1fa   : > { %1663 = vmatpush3.bf16.msra.mxu1 %v1656_v53 }
 0x1fb   : > { %1670 = vmatprep.subr.bf16.mxu1 %v1756_v9 }
 0x2c0   : > { %v720_v55 = vpop.f32.mrb[2].mxu1 }
 0x2c1   : > { %v724_v56 = vadd.f32 %v720_v55, %v650_v54  ;;  %v1529_v57 = vpop.f32.mrb[3].mxu1 }
 0x2c3   : > { %1718 = vtanh.f32 %v724_v56 }
 0x2c8   : > { %v1551_v59 = vpop.f32.mrb[4].mxu1 }
 0x2c9   : > { %v907_v60 = vadd.f32 %v1551_v59, %v1407_v58  ;;  %v901_v61 = vpop.f32.mrb[5].mxu1 }
 0x2ca   : > { %v902_v62 = vadd.f32 %v1407_v58, %v901_v61 }
 0x2cb   : > { %921 = vst.msk [vmem:[#allocation2 + $0x8] sm:$0xff] %vm483_vm6, %v907_v60 }
 0x2cc   : > { %920 = vst.msk [vmem:[#allocation2] sm:$0xff] %vm483_vm6, %v902_v62 }
 0x2cd   : > { %v1719_v63 = vpop.eup %1718 }
 0x2ce   : > { %727 = vst.msk [vmem:[#allocation3 + $0x10] sm:$0xff] %vm483_vm6, %v1719_v63  ;;  %1539 = vmatmul.mubr.msk.f32.vlgmr.msra.gmra.mrb[6].mxu0 %vm483_vm6, %v1719_v63 }
 0x2cf   : > { %1654 = vmatpush3.bf16.msra.mxu0 %v1653_v50  ;;  %1563 = vmatprep.mubr.msk.f32.mxu0 %vm1757_vm5, %v1758_v15 }
 0x2d0   : > { %1655 = vmatprep.subr.bf16.mxu0 %v1756_v9 }
 0x2d2   : > { %v1006_v19 = vld [vmem:[#allocation2 + $0x8] sm:$0xff] }
 0x2d3   : > { %1657 = vmatpush3.bf16.msra.mxu0 %v1656_v53  ;;  %v930_v8 = vld [vmem:[#allocation2] sm:$0xff] }
 0x2d4   : > { %1664 = vmatprep.subr.bf16.mxu0 %v1756_v9 }
 0x2d5   : > { %v810_v1 = vld [vmem:[#allocation3 + $0x10] sm:$0xff] }
 0x2d6   : > { %1564 = vmatmul.mubr.msk.f32.vlgmr.msra.gmra.mrb[8].mxu0 %vm483_vm6, %v929_v0  ;;  %1552 = vmatprep.mubr.msk.f32.mxu1 %vm483_vm6, %v810_v1 }
 0x2d7   : > { %1666 = vmatpush3.bf16.msra.mxu0 %v1653_v50  ;;  %1585 = vmatprep.mubr.msk.f32.mxu0 %vm1757_vm5, %v1758_v15 }
 0x2d8   : > { %1667 = vmatprep.subr.bf16.mxu0 %v1756_v9 }
 0x2db   : > { %1669 = vmatpush3.bf16.msra.mxu0 %v1656_v53 }
 0x2dc   : > { %1676 = vmatprep.subr.bf16.mxu0 (!%p1416_p6), %v1759_v35 }
 0x3a1   : > { %v799_v3 = vpop.f32.mrb[6].mxu0 }
 0x3a2   : > { %v803_v4 = vadd.f32 %v799_v3, %v729_v2  ;;  %v1540_v5 = vpop.f32.mrb[7].mxu0 }
 0x3a4   : > { %1720 = vtanh.f32 %v803_v4 }
 0x3a9   : > { %v1000_v6 = vpop.f32.mrb[8].mxu0 }
 0x3aa   : > { %v1565_v7 = vpop.f32.mrb[9].mxu0  ;;  %v1004_v10 = vadd.f32 %v1000_v6, %v930_v8 }
 0x3ac   : > { %1722 = vtanh.f32 %v1004_v10 }
 0x3ae   : > { %v1721_v11 = vpop.eup %1720 }
 0x3af   : > { %806 = vst.msk [vmem:[#allocation3 + $0x18] sm:$0xff] %vm483_vm6, %v1721_v11  ;;  %807 = vst.msk [vmem:[#allocation4] sm:$0xff] %vm483_vm6, %v1721_v11 }
 0x3b6   : > { %v811_v12 = vld [vmem:[#allocation3 + $0x18] sm:$0xff]  ;;  %v1723_v13 = vpop.eup %1722 }
 0x3b7   : > { %1553 = vmatmul.mubr.msk.f32.gmra.mrb[6].mxu1 %vm483_vm6, %v811_v12 }
 0x3b8   : > { %1574 = vmatprep.mubr.msk.f32.mxu1 %vm1757_vm5, %v1758_v15 }
 0x3bb   : > { %1575 = vmatmul.mubr.msk.f32.vlgmr.msra.gmra.mrb[8].mxu1 %vm483_vm6, %v1723_v13 }
 0x3bc   : > { %1672 = vmatpush3.bf16.msra.mxu1 %v1653_v50  ;;  %1596 = vmatprep.mubr.msk.f32.mxu1 %vm1757_vm5, %v1758_v15 }
 0x3bd   : > { %1673 = vmatprep.subr.bf16.mxu1 %v1756_v9 }
 0x3c0   : > { %1675 = vmatpush3.bf16.msra.mxu1 %v1656_v53 }
 0x48a   : > { %v1554_v14 = vpop.f32.mrb[6].mxu1 }
 0x48b   : > { %v917_v16 = vadd.f32 %v1554_v14, %v1407_v58  ;;  %v911_v17 = vpop.f32.mrb[7].mxu1 }
 0x48c   : > { %v912_v18 = vadd.f32 %v1407_v58, %v911_v17 }
 0x48d   : > { %923 = vst.msk [vmem:[#allocation2 + $0x18] sm:$0xff] %vm483_vm6, %v917_v16 }
 0x48e   : > { %922 = vst.msk [vmem:[#allocation2 + $0x10] sm:$0xff] %vm483_vm6, %v912_v18  ;;  %v1076_v20 = vpop.f32.mrb[8].mxu1 }
 0x48f   : > { %v1080_v21 = vadd.f32 %v1076_v20, %v1006_v19  ;;  %v1576_v22 = vpop.f32.mrb[9].mxu1 }
 0x491   : > { %1724 = vtanh.f32 %v1080_v21 }
 0x494   : > { %v1158_v27 = vld [vmem:[#allocation2 + $0x18] sm:$0xff] }
 0x495   : > { %v1082_v15 = vld [vmem:[#allocation2 + $0x10] sm:$0xff] }
 0x49b   : > { %v1725_v23 = vpop.eup %1724 }
 0x49c   : > { %1586 = vmatmul.mubr.msk.f32.vlgmr.msra.gmra.mrb[10].mxu0 %vm483_vm6, %v1725_v23 }
 0x49d   : > { %1607 = vmatprep.mubr.msk.f32.mxu0 (!%p1416_p6), %vm1760_vm7, %v1761_v38  ;;  %1678 = vmatpush3.bf16.msra.mxu0 (!%p1416_p6), %v1677_v36 }
 0x49e   : > { %1679 = vmatprep.subr.bf16.mxu0 (!%p1416_p6), %v1759_v35 }
 0x4a1   : > { %1681 = vmatpush3.bf16.msra.mxu0 (!%p1416_p6), %v1680_v39 }
 0x56f   : > { %v1152_v24 = vpop.f32.mrb[10].mxu0 }
 0x570   : > { %v1156_v9 = vadd.f32 %v1152_v24, %v1082_v15  ;;  %v1587_v25 = vpop.f32.mrb[11].mxu0 }
 0x572   : > { %1726 = vtanh.f32 %v1156_v9 }
 0x57c   : > { %v1727_v26 = vpop.eup %1726 }
 0x57d   : > { %1597 = vmatmul.mubr.msk.f32.vlgmr.msra.gmra.mrb[10].mxu1 %vm483_vm6, %v1727_v26 }
 0x650   : > { %v1228_v28 = vpop.f32.mrb[10].mxu1 }
 0x651   : > { %v1232_v29 = vadd.f32 %v1228_v28, %v1158_v27  ;;  %v1598_v30 = vpop.f32.mrb[11].mxu1 }
 0x653   : > { %1728 = vtanh.f32 %v1232_v29 }
 0x658   : > { %1238 = sbr.rel (%p1416_p6) target bundleno = 1845 (0x735), region = 64 }
 0x65d   : > { %v1729_v31 = vpop.eup %1728 }
 0x65e   : > { %1234 = vst.msk [vmem:[#allocation4 + $0x8] sm:$0xff] %vm483_vm6, %v1729_v31  ;;  %1608 = vmatmul.mubr.msk.f32.vlgmr.msra.gmra.mrb[0].mxu0 (!%p1416_p6), %vm483_vm6, %v1729_v31 }
 0x731   : > { %v1319_v41 = vpop.f32.mrb[0].mxu0 }
 0x732   : > { %v1320_v42 = vadd.f32 %v1417_v40, %v1319_v41  ;;  %v1609_v43 = vpop.f32.mrb[1].mxu0 }
 0x734   : > { %1324 = vst.msk [vmem:[%s2005_s9] sm:$0xff] %vm1323_vm8, %v1320_v42 }
 0x735 PF: > { %s19_s11 = sadd.s32 1, %s1752_s11   ;;  %s2008_s30 = smov %s1748_s10 }
 0x736   : > { %p16_p7 = scmp.ge.s32.totalorder %s19_s11, 4   ;;  %s2009_s10 = smov %s2011_s12 }
 0x738   :  { %18 = sbr.rel (!%p16_p7) target bundleno = 2 (0x2), region = 101 }

</bundles_post_ra>
